<compile_context>
chip_gen: v7x
topology: tpu7x:2x2x1
jax: 0.10.0
libtpu: 0.0.40
codegen_flags: <defaults>
</compile_context>

<pallas_src>
import functools

import numpy as np
import jax
import jax.numpy as jnp
from jax import lax
from jax.experimental import pallas as pl
from jax.experimental.pallas import tpu as pltpu


def _round_up(x, m):
    return ((x + m - 1) // m) * m


# ----------------------------------------------------------------------------
# Pallas kernel: one tile of anchors (lanes) vs. all embeddings (sublanes)
# ----------------------------------------------------------------------------
def _triplet_tile_kernel(x_all_ref, x_anc_ref, n2_all_ref, n2_anc_ref,
                         lab_all_ref, lab_anc_ref, out_ref, sp_ref,
                         *, margin, n_valid):
    eps = 1e-8                                   # F.cosine_similarity default
    big = jnp.float32(1e30)                      # finite sentinel (no inf-inf NaNs)
    npad = x_all_ref.shape[0]                    # padded batch size (sublanes)
    ta = x_anc_ref.shape[0]                      # anchors in this tile (lanes)

    # Transposed-orientation cosine similarities: sT[j, a] = cos(x_j, anchor_a).
    # MXU matmul with Npad rows (full systolic-array rows), contracting D directly.
    g = lax.dot_general(x_all_ref[...], x_anc_ref[...],
                        (((1,), (1,)), ((), ())),
                        preferred_element_type=jnp.float32)            # (Np, TA)
    prod2 = n2_all_ref[...] * n2_anc_ref[...]                          # (Np,1)*(1,TA)
    s = g * lax.rsqrt(jnp.maximum(prod2, jnp.float32(eps * eps)))      # (Np, TA)

    # All-triplets validity masks for this anchor tile.
    same = lab_all_ref[...] == lab_anc_ref[...]                        # (Np, TA)
    j_idx = lax.broadcasted_iota(jnp.int32, (npad, ta), 0)             # "all" index
    a_idx = (lax.broadcasted_iota(jnp.int32, (npad, ta), 1)
             + pl.program_id(0) * ta)                                  # global anchor
    j_ok = j_idx < n_valid
    a_ok = a_idx < n_valid
    pos = same & (j_idx != a_idx) & j_ok & a_ok                        # valid positives
    neg = jnp.logical_not(same) & j_ok & a_ok                          # valid negatives

    # 2-D sentinel masking: invalid positives -> +big, invalid negatives -> -big,
    # so relu(sn - sp) is exactly 0 for every invalid (p, n) pair.
    sp_ref[...] = jnp.where(pos, s, big) - jnp.float32(margin)         # (Np, TA) scratch
    sn = jnp.where(neg, s, -big)                                       # (Np, TA)

    # Chunked O(N^3) hinge reduction: loop over positive rows in aligned blocks
    # of 8 sublanes; per (positive p) the update is a 2-D VPU sub+relu+add into
    # the (Np, TA) accumulator.  No 3-D intermediates, no per-chunk reductions.
    nblk = (n_valid + 7) // 8

    def body(pb, acc):
        start = pl.multiple_of(pb * 8, 8)
        blk = sp_ref[pl.ds(start, 8), :]                               # (8, TA)
        for r in range(8):                                             # static unroll
            acc = acc + jnp.maximum(sn - blk[r:r + 1, :], 0.0)
        return acc

    acc = lax.fori_loop(0, nblk, body, jnp.zeros((npad, ta), jnp.float32))

    # Single cross-lane/cross-sublane reduce per tile; lane-dense output slab.
    out_ref[...] = jnp.broadcast_to(jnp.sum(acc), out_ref.shape)


# ----------------------------------------------------------------------------
# Wrapper: OnlineTripletLoss.forward (all-triplets selector)
# ----------------------------------------------------------------------------
def online_triplet_loss(embeddings, target, margin, *, tile_anchors=128):
    """Returns (mean hinge loss over all valid triplets, number of triplets)."""
    n, d = embeddings.shape
    ta = _round_up(max(int(tile_anchors), 128), 128)
    # Keep >= 2 grid tiles whenever n > 128 so both v7x TensorCores get work.
    ta = min(ta, max(128, _round_up((n + 1) // 2, 128)))
    npad = _round_up(n, ta)
    ntiles = npad // ta

    # Embeddings keep their incoming dtype (bf16 stays bf16 into the MXU).
    x = jnp.pad(embeddings, ((0, npad - n), (0, 0)))
    xf = embeddings.astype(jnp.float32)
    n2 = jnp.pad(jnp.sum(xf * xf, axis=1), (0, npad - n))              # hoisted norms
    lab = jnp.pad(target.astype(jnp.int32), (0, npad - n), constant_values=-1)

    n2_col = n2.reshape(npad, 1)
    n2_row = n2.reshape(1, npad)
    lab_col = lab.reshape(npad, 1)
    lab_row = lab.reshape(1, npad)

    kernel = functools.partial(_triplet_tile_kernel,
                               margin=float(margin), n_valid=int(n))

    # VMEM budget from the actual buffers (double-buffered inputs + scratch +
    # live 2-D values), capped by this generation's physical VMEM.
    itemsize = jnp.dtype(embeddings.dtype).itemsize
    est = (2 * npad * d * itemsize         # resident all-embeddings block
           + 2 * ta * d * itemsize         # anchor tile
           + npad * ta * 4                 # sp scratch
           + 4 * npad * ta * 4             # s / sn / acc live values
           + 2 * 8 * 128 * 4               # output block
           + 8 * npad * 4)                 # norm / label vectors
    try:
        vmem_cap = int(pltpu.get_tpu_info().vmem_capacity_bytes)
    except Exception:
        vmem_cap = 64 * 1024 * 1024
    vmem_limit = int(min(max(2 * est, 32 * 1024 * 1024), int(vmem_cap * 0.85)))

    parts = pl.pallas_call(
        kernel,
        out_shape=jax.ShapeDtypeStruct((ntiles, 8, 128), jnp.float32),
        grid=(ntiles,),
        in_specs=[
            pl.BlockSpec((npad, d), lambda i: (0, 0)),     # all embeddings (resident)
            pl.BlockSpec((ta, d), lambda i: (i, 0)),       # anchor tile rows
            pl.BlockSpec((npad, 1), lambda i: (0, 0)),     # all squared norms (col)
            pl.BlockSpec((1, ta), lambda i: (0, i)),       # anchor squared norms (row)
            pl.BlockSpec((npad, 1), lambda i: (0, 0)),     # all labels (col)
            pl.BlockSpec((1, ta), lambda i: (0, i)),       # anchor labels (row)
        ],
        out_specs=pl.BlockSpec((1, 8, 128), lambda i: (i, 0, 0)),
        scratch_shapes=[pltpu.VMEM((npad, ta), jnp.float32)],
        compiler_params=pltpu.CompilerParams(
            dimension_semantics=("parallel",),
            vmem_limit_bytes=vmem_limit,
        ),
    )(x, x, n2_col, n2_row, lab_col, lab_row)

    loss_sum = jnp.sum(parts[:, 0, 0])

    # Number of valid triplets (matches the in-kernel masks exactly):
    # per anchor, (#same-label - 1) positives * (#different-label) negatives.
    same = target[:, None] == target[None, :]
    same_cnt = jnp.sum(same.astype(jnp.int32), axis=1)
    num_triplets = jnp.sum((same_cnt - 1) * (jnp.int32(n) - same_cnt))

    cnt_f = jnp.maximum(num_triplets.astype(jnp.float32), 1.0)
    loss = jnp.where(num_triplets > 0, loss_sum / cnt_f, jnp.float32(0.0))
    return loss, num_triplets          # traced int32 (no host sync / no int() on tracer)


# ----------------------------------------------------------------------------
# Host-side / pure-JAX references (verification only)
# ----------------------------------------------------------------------------
def all_triplets_selector(target_np):
    triplets = []
    n = target_np.shape[0]
    for a in range(n):
        for p in range(n):
            if p == a or target_np[p] != target_np[a]:
                continue
            for neg in range(n):
                if target_np[neg] == target_np[a]:
                    continue
                triplets.append((a, p, neg))
    return np.asarray(triplets, dtype=np.int32).reshape(-1, 3)


def _ref_loss_gather(embeddings, triplets, margin):
    eps = 1e-8
    a = embeddings[triplets[:, 0]].astype(jnp.float32)
    p = embeddings[triplets[:, 1]].astype(jnp.float32)
    n = embeddings[triplets[:, 2]].astype(jnp.float32)

    def cos(x, y):
        num = jnp.sum(x * y, axis=-1)
        den = jnp.maximum(jnp.linalg.norm(x, axis=-1) *
                          jnp.linalg.norm(y, axis=-1), eps)
        return num / den

    losses = jax.nn.relu(cos(a, n) - cos(a, p) + margin)
    return jnp.mean(losses)


def _ref_loss_dense(embeddings, target, margin):
    eps = 1e-8
    x = embeddings.astype(jnp.float32)
    n2 = jnp.sum(x * x, axis=1)
    s = (x @ x.T) * lax.rsqrt(jnp.maximum(n2[:, None] * n2[None, :], eps * eps))
    nb = x.shape[0]
    idx = jnp.arange(nb)
    same = target[:, None] == target[None, :]
    pos = same & (idx[:, None] != idx[None, :])
    neg = jnp.logical_not(same)
    d3 = s[:, None, :] - s[:, :, None] + margin
    valid = pos[:, :, None] & neg[:, None, :]
    cnt = jnp.sum(valid.astype(jnp.int32))
    total = jnp.sum(jnp.where(valid, jnp.maximum(d3, 0.0), 0.0))
    return total / cnt.astype(jnp.float32), cnt


if __name__ == "__main__":
    key = jax.random.PRNGKey(0)
    k1, k2 = jax.random.split(key)
    margin = 0.5

    # Case 1: tiny batch, checked against an explicit-triplet reference that
    # mirrors the PyTorch module exactly.
    N1, D1 = 8, 32
    emb1 = jax.random.normal(k1, (N1, D1), dtype=jnp.float32)
    tgt1 = jnp.array([0, 0, 0, 0, 1, 1, 1, 1], dtype=jnp.int32)

    loss1, cnt1 = online_triplet_loss(emb1, tgt1, margin)
    loss1 = jax.block_until_ready(loss1)

    trips = all_triplets_selector(np.asarray(jax.device_get(tgt1)))
    ref1 = jax.block_until_ready(_ref_loss_gather(emb1, jnp.asarray(trips), margin))
    assert int(jax.device_get(cnt1)) == trips.shape[0], (cnt1, trips.shape[0])
    np.testing.assert_allclose(np.asarray(loss1), np.asarray(ref1),
                               rtol=1e-5, atol=1e-5)

    # Case 2: multi-tile path (2 anchor tiles -> the "parallel" grid axis is
    # exercised; both v7x TensorCores get work), checked against a dense
    # mask-based pure-JAX reference.
    N2, D2 = 160, 64
    emb2 = jax.random.normal(k2, (N2, D2), dtype=jnp.float32)
    tgt2 = (jnp.arange(N2) % 5).astype(jnp.int32)

    loss2, cnt2 = online_triplet_loss(emb2, tgt2, margin)
    loss2 = jax.block_until_ready(loss2)
    ref2, refcnt2 = _ref_loss_dense(emb2, tgt2, margin)
    assert int(jax.device_get(cnt2)) == int(jax.device_get(refcnt2))
    np.testing.assert_allclose(np.asarray(loss2), np.asarray(ref2),
                               rtol=2e-4, atol=1e-5)

    print("KERNEL_OK")
</pallas_src>

<mosaic_0001>
module attributes {stable_mosaic.version = 11 : i64} {
  func.func @_triplet_tile_kernel(%arg0: i32, %arg1: memref<128x32xf32, #tpu.memory_space<vmem>>, %arg2: memref<128x32xf32, #tpu.memory_space<vmem>>, %arg3: memref<128x1xf32, #tpu.memory_space<vmem>>, %arg4: memref<1x128xf32, #tpu.memory_space<vmem>>, %arg5: memref<128x1xi32, #tpu.memory_space<vmem>>, %arg6: memref<1x128xi32, #tpu.memory_space<vmem>>, %arg7: memref<1x8x128xf32, #tpu.memory_space<vmem>>, %arg8: memref<128x128xf32, #tpu.memory_space<vmem>>) attributes {dimension_semantics = [#tpu.dimension_semantics<parallel>], iteration_bounds = array<i64: 1>, scalar_prefetch = 0 : i64, scratch_operands = 1 : i64, tpu.core_type = #tpu.core_type<tc>, window_params = [{pipeline_mode = #tpu.pipeline_mode<synchronous>, transform_indices = @transform_0, window_bounds = array<i64: 128, 32>}, {transform_indices = @transform_1, window_bounds = array<i64: 128, 32>}, {pipeline_mode = #tpu.pipeline_mode<synchronous>, transform_indices = @transform_2, window_bounds = array<i64: 128, 1>}, {transform_indices = @transform_3, window_bounds = array<i64: 1, 128>}, {pipeline_mode = #tpu.pipeline_mode<synchronous>, transform_indices = @transform_4, window_bounds = array<i64: 128, 1>}, {transform_indices = @transform_5, window_bounds = array<i64: 1, 128>}, {transform_indices = @transform_6, window_bounds = array<i64: 1, 8, 128>}]} {
    %c0 = arith.constant 0 : index
    %c0_0 = arith.constant 0 : index
    %0 = vector.load %arg1[%c0, %c0_0] : memref<128x32xf32, #tpu.memory_space<vmem>>, vector<128x32xf32>
    %c0_1 = arith.constant 0 : index
    %c0_2 = arith.constant 0 : index
    %1 = vector.load %arg2[%c0_1, %c0_2] : memref<128x32xf32, #tpu.memory_space<vmem>>, vector<128x32xf32>
    %cst = arith.constant dense<0.000000e+00> : vector<128x128xf32>
    %2 = tpu.matmul %0, %1, %cst {dimension_numbers = #tpu.dot_dimension_numbers<[1], [1], [0], [0], [0, 0, 1, 0], [], []>} : vector<128x32xf32>, vector<128x32xf32>, vector<128x128xf32> -> vector<128x128xf32>
    %c0_3 = arith.constant 0 : index
    %c0_4 = arith.constant 0 : index
    %3 = vector.load %arg3[%c0_3, %c0_4] : memref<128x1xf32, #tpu.memory_space<vmem>>, vector<128x1xf32>
    %c0_5 = arith.constant 0 : index
    %c0_6 = arith.constant 0 : index
    %4 = vector.load %arg4[%c0_5, %c0_6] : memref<1x128xf32, #tpu.memory_space<vmem>>, vector<1x128xf32>
    %5 = vector.broadcast %3 : vector<128x1xf32> to vector<128x128xf32>
    %6 = vector.broadcast %4 : vector<1x128xf32> to vector<128x128xf32>
    %7 = arith.mulf %5, %6 : vector<128x128xf32>
    %cst_7 = arith.constant 1.000000e-16 : f32
    %8 = vector.broadcast %cst_7 : f32 to vector<128x128xf32>
    %9 = arith.maximumf %7, %8 : vector<128x128xf32>
    %10 = math.rsqrt %9 : vector<128x128xf32>
    %11 = arith.mulf %2, %10 : vector<128x128xf32>
    %c0_8 = arith.constant 0 : index
    %c0_9 = arith.constant 0 : index
    %12 = vector.load %arg5[%c0_8, %c0_9] : memref<128x1xi32, #tpu.memory_space<vmem>>, vector<128x1xi32>
    %c0_10 = arith.constant 0 : index
    %c0_11 = arith.constant 0 : index
    %13 = vector.load %arg6[%c0_10, %c0_11] : memref<1x128xi32, #tpu.memory_space<vmem>>, vector<1x128xi32>
    %14 = vector.broadcast %12 : vector<128x1xi32> to vector<128x128xi32>
    %15 = vector.broadcast %13 : vector<1x128xi32> to vector<128x128xi32>
    %16 = arith.cmpi eq, %14, %15 : vector<128x128xi32>
    %17 = tpu.iota {dimensions = array<i32: 0>} : vector<128x128xi32>
    %18 = tpu.iota {dimensions = array<i32: 1>} : vector<128x128xi32>
    %c128_i32 = arith.constant 128 : i32
    %19 = arith.muli %arg0, %c128_i32 : i32
    %20 = vector.broadcast %19 : i32 to vector<128x128xi32>
    %21 = arith.addi %18, %20 : vector<128x128xi32>
    %c8_i32 = arith.constant 8 : i32
    %22 = vector.broadcast %c8_i32 : i32 to vector<128x128xi32>
    %23 = arith.cmpi slt, %17, %22 : vector<128x128xi32>
    %c8_i32_12 = arith.constant 8 : i32
    %24 = vector.broadcast %c8_i32_12 : i32 to vector<128x128xi32>
    %25 = arith.cmpi slt, %21, %24 : vector<128x128xi32>
    %26 = arith.cmpi ne, %17, %21 : vector<128x128xi32>
    %27 = arith.andi %16, %26 : vector<128x128xi1>
    %28 = arith.andi %27, %23 : vector<128x128xi1>
    %29 = arith.andi %28, %25 : vector<128x128xi1>
    %cst_13 = arith.constant dense<true> : vector<128x128xi1>
    %30 = arith.xori %16, %cst_13 : vector<128x128xi1>
    %31 = arith.andi %30, %23 : vector<128x128xi1>
    %32 = arith.andi %31, %25 : vector<128x128xi1>
    %cst_14 = arith.constant 1.000000e+30 : f32
    %33 = vector.broadcast %cst_14 : f32 to vector<128x128xf32>
    %34 = arith.select %29, %11, %33 : vector<128x128xi1>, vector<128x128xf32>
    %cst_15 = arith.constant 5.000000e-01 : f32
    %35 = vector.broadcast %cst_15 : f32 to vector<128x128xf32>
    %36 = arith.subf %34, %35 : vector<128x128xf32>
    %c0_16 = arith.constant 0 : index
    %c0_17 = arith.constant 0 : index
    %37 = vector.load %arg8[%c0_16, %c0_17] : memref<128x128xf32, #tpu.memory_space<vmem>>, vector<128x128xf32>
    tpu.vector_store %arg8[%c0_16, %c0_17], %36 {strides = array<i32>} : memref<128x128xf32, #tpu.memory_space<vmem>>, vector<128x128xf32>,
    %cst_18 = arith.constant 0.000000e+00 : f32
    %cst_19 = arith.constant 1.000000e+30 : f32
    %38 = arith.subf %cst_18, %cst_19 : f32
    %39 = vector.broadcast %38 : f32 to vector<128x128xf32>
    %40 = arith.select %32, %11, %39 : vector<128x128xi1>, vector<128x128xf32>
    %cst_20 = arith.constant 0.000000e+00 : f32
    %41 = vector.broadcast %cst_20 : f32 to vector<128x128xf32>
    %c0_i32 = arith.constant 0 : i32
    %c8_i32_21 = arith.constant 8 : i32
    %42 = arith.muli %c0_i32, %c8_i32_21 : i32
    %43 = tpu.assume_multiple %42, 8 : i32
    %44 = arith.index_cast %43 : i32 to index
    %c0_22 = arith.constant 0 : index
    %45 = vector.load %arg8[%44, %c0_22] : memref<128x128xf32, #tpu.memory_space<vmem>>, vector<8x128xf32>
    %46 = vector.extract_strided_slice %45 {offsets = [0, 0], sizes = [1, 128], strides = [1, 1]} : vector<8x128xf32> to vector<1x128xf32>
    %47 = vector.broadcast %46 : vector<1x128xf32> to vector<128x128xf32>
    %48 = arith.subf %40, %47 : vector<128x128xf32>
    %cst_23 = arith.constant 0.000000e+00 : f32
    %49 = vector.broadcast %cst_23 : f32 to vector<128x128xf32>
    %50 = arith.maximumf %48, %49 : vector<128x128xf32>
    %51 = arith.addf %41, %50 : vector<128x128xf32>
    %52 = vector.extract_strided_slice %45 {offsets = [1, 0], sizes = [1, 128], strides = [1, 1]} : vector<8x128xf32> to vector<1x128xf32>
    %53 = vector.broadcast %52 : vector<1x128xf32> to vector<128x128xf32>
    %54 = arith.subf %40, %53 : vector<128x128xf32>
    %cst_24 = arith.constant 0.000000e+00 : f32
    %55 = vector.broadcast %cst_24 : f32 to vector<128x128xf32>
    %56 = arith.maximumf %54, %55 : vector<128x128xf32>
    %57 = arith.addf %51, %56 : vector<128x128xf32>
    %58 = vector.extract_strided_slice %45 {offsets = [2, 0], sizes = [1, 128], strides = [1, 1]} : vector<8x128xf32> to vector<1x128xf32>
    %59 = vector.broadcast %58 : vector<1x128xf32> to vector<128x128xf32>
    %60 = arith.subf %40, %59 : vector<128x128xf32>
    %cst_25 = arith.constant 0.000000e+00 : f32
    %61 = vector.broadcast %cst_25 : f32 to vector<128x128xf32>
    %62 = arith.maximumf %60, %61 : vector<128x128xf32>
    %63 = arith.addf %57, %62 : vector<128x128xf32>
    %64 = vector.extract_strided_slice %45 {offsets = [3, 0], sizes = [1, 128], strides = [1, 1]} : vector<8x128xf32> to vector<1x128xf32>
    %65 = vector.broadcast %64 : vector<1x128xf32> to vector<128x128xf32>
    %66 = arith.subf %40, %65 : vector<128x128xf32>
    %cst_26 = arith.constant 0.000000e+00 : f32
    %67 = vector.broadcast %cst_26 : f32 to vector<128x128xf32>
    %68 = arith.maximumf %66, %67 : vector<128x128xf32>
    %69 = arith.addf %63, %68 : vector<128x128xf32>
    %70 = vector.extract_strided_slice %45 {offsets = [4, 0], sizes = [1, 128], strides = [1, 1]} : vector<8x128xf32> to vector<1x128xf32>
    %71 = vector.broadcast %70 : vector<1x128xf32> to vector<128x128xf32>
    %72 = arith.subf %40, %71 : vector<128x128xf32>
    %cst_27 = arith.constant 0.000000e+00 : f32
    %73 = vector.broadcast %cst_27 : f32 to vector<128x128xf32>
    %74 = arith.maximumf %72, %73 : vector<128x128xf32>
    %75 = arith.addf %69, %74 : vector<128x128xf32>
    %76 = vector.extract_strided_slice %45 {offsets = [5, 0], sizes = [1, 128], strides = [1, 1]} : vector<8x128xf32> to vector<1x128xf32>
    %77 = vector.broadcast %76 : vector<1x128xf32> to vector<128x128xf32>
    %78 = arith.subf %40, %77 : vector<128x128xf32>
    %cst_28 = arith.constant 0.000000e+00 : f32
    %79 = vector.broadcast %cst_28 : f32 to vector<128x128xf32>
    %80 = arith.maximumf %78, %79 : vector<128x128xf32>
    %81 = arith.addf %75, %80 : vector<128x128xf32>
    %82 = vector.extract_strided_slice %45 {offsets = [6, 0], sizes = [1, 128], strides = [1, 1]} : vector<8x128xf32> to vector<1x128xf32>
    %83 = vector.broadcast %82 : vector<1x128xf32> to vector<128x128xf32>
    %84 = arith.subf %40, %83 : vector<128x128xf32>
    %cst_29 = arith.constant 0.000000e+00 : f32
    %85 = vector.broadcast %cst_29 : f32 to vector<128x128xf32>
    %86 = arith.maximumf %84, %85 : vector<128x128xf32>
    %87 = arith.addf %81, %86 : vector<128x128xf32>
    %88 = vector.extract_strided_slice %45 {offsets = [7, 0], sizes = [1, 128], strides = [1, 1]} : vector<8x128xf32> to vector<1x128xf32>
    %89 = vector.broadcast %88 : vector<1x128xf32> to vector<128x128xf32>
    %90 = arith.subf %40, %89 : vector<128x128xf32>
    %cst_30 = arith.constant 0.000000e+00 : f32
    %91 = vector.broadcast %cst_30 : f32 to vector<128x128xf32>
    %92 = arith.maximumf %90, %91 : vector<128x128xf32>
    %93 = arith.addf %87, %92 : vector<128x128xf32>
    %c1_i32 = arith.constant 1 : i32
    %94 = vector.shape_cast %93 : vector<128x128xf32> to vector<1x128x128xf32>
    %cst_31 = arith.constant dense<0.000000e+00> : vector<1xf32>
    %95 = vector.multi_reduction <add>, %94, %cst_31 [1, 2] : vector<1x128x128xf32> to vector<1xf32>
    %96 = vector.shape_cast %95 : vector<1xf32> to vector<1x1x1xf32>
    %97 = vector.extract %96[0, 0, 0] : f32 from vector<1x1x1xf32>
    %98 = vector.broadcast %97 : f32 to vector<1x8x128xf32>
    %c0_32 = arith.constant 0 : index
    %c0_33 = arith.constant 0 : index
    %c0_34 = arith.constant 0 : index
    %99 = vector.load %arg7[%c0_32, %c0_33, %c0_34] : memref<1x8x128xf32, #tpu.memory_space<vmem>>, vector<1x8x128xf32>
    tpu.vector_store %arg7[%c0_32, %c0_33, %c0_34], %98 {strides = array<i32>} : memref<1x8x128xf32, #tpu.memory_space<vmem>>, vector<1x8x128xf32>,
    return
  }
  func.func @transform_0(%arg0: i32) -> (i32, i32) {
    %c0_i32 = arith.constant 0 : i32
    %c0_i32_0 = arith.constant 0 : i32
    %c0_i32_1 = arith.constant 0 : i32
    return %c0_i32, %c0_i32_0 : i32, i32
  }
  func.func @transform_1(%arg0: i32) -> (i32, i32) {
    %c0_i32 = arith.constant 0 : i32
    %c0_i32_0 = arith.constant 0 : i32
    return %arg0, %c0_i32 : i32, i32
  }
  func.func @transform_2(%arg0: i32) -> (i32, i32) {
    %c0_i32 = arith.constant 0 : i32
    %c0_i32_0 = arith.constant 0 : i32
    %c0_i32_1 = arith.constant 0 : i32
    return %c0_i32, %c0_i32_0 : i32, i32
  }
  func.func @transform_3(%arg0: i32) -> (i32, i32) {
    %c0_i32 = arith.constant 0 : i32
    %c0_i32_0 = arith.constant 0 : i32
    return %c0_i32, %arg0 : i32, i32
  }
  func.func @transform_4(%arg0: i32) -> (i32, i32) {
    %c0_i32 = arith.constant 0 : i32
    %c0_i32_0 = arith.constant 0 : i32
    %c0_i32_1 = arith.constant 0 : i32
    return %c0_i32, %c0_i32_0 : i32, i32
  }
  func.func @transform_5(%arg0: i32) -> (i32, i32) {
    %c0_i32 = arith.constant 0 : i32
    %c0_i32_0 = arith.constant 0 : i32
    return %c0_i32, %arg0 : i32, i32
  }
  func.func @transform_6(%arg0: i32) -> (i32, i32, i32) {
    %c0_i32 = arith.constant 0 : i32
    %c0_i32_0 = arith.constant 0 : i32
    %c0_i32_1 = arith.constant 0 : i32
    return %arg0, %c0_i32, %c0_i32_0 : i32, i32, i32
  }
}

</mosaic_0001>

<bundles_post_ra>
// kernel: tpu_custom_call.1
= control target key start
LH: loop header
LB: loop body
LE: loop exit
PB: predicated region body
PF: predicated region fallthrough
CT: control target
= control target key end

     0   :  { %vm56_vm0 = vcmask 261120   ;;  %v1441_v6 = vmov 0   ;;  %s1687_s0 = inlined_call_operand.vmem [shape: f32[128,32], index: 0, kind: input, shape index: {}]   ;;  %s1688_s1 = inlined_call_operand.vmem [shape: f32[128,32], index: 1, kind: input, shape index: {}]   ;;  %s1689_s2 = inlined_call_operand.vmem [shape: f32[128,1], index: 2, kind: input, shape index: {}]   ;;  %s1690_s3 = inlined_call_operand.vmem [shape: f32[1,128], index: 3, kind: input, shape index: {}]   ;;  %s1691_s4 = inlined_call_operand.vmem [shape: s32[128,1], index: 4, kind: input, shape index: {}]   ;;  %s1692_s5 = inlined_call_operand.vmem [shape: s32[1,128], index: 5, kind: input, shape index: {}]   ;;  %s1693_s6 = inlined_call_operand.hbm [shape: f32[1,8,128], index: 6, kind: output, shape index: {}]  }
   0x1   :  { %v40_v0 = vld [vmem:[%s1688_s1] sm:$0xff]  ;;  %v41_v1 = vld [vmem:[%s1688_s1 + $0x8] sm:$0xff]  ;;  %v42_v2 = vld [vmem:[%s1688_s1 + $0x10] sm:$0xff]  ;;  %1414 = vset.pattern.permute.xlu0 %v1441_v6 }
   0x2   :  { %v1345_v3 = vpack.c.bf16 %v41_v1, %v40_v0  ;;  %vm1490_vm1 = vmpackc.low %vm56_vm0, %vm56_vm0  ;;  %v43_v5 = vld [vmem:[%s1688_s1 + $0x18] sm:$0xff]  ;;  %v24_v8 = vld [vmem:[%s1687_s0] sm:$0xff] }
   0x3   :  { %v1351_v7 = vpack.c.bf16 %v43_v5, %v42_v2  ;;  %v44_v9 = vld [vmem:[%s1688_s1 + $0x20] sm:$0xff]  ;;  %v45_v10 = vld [vmem:[%s1688_s1 + $0x28] sm:$0xff]  ;;  %1321 = vmatprep.mubr.msk.f32.mxu0 %vm56_vm0, %v24_v8 }
   0x4   :  { %1347 = vmatprep.subr.msk.bf16.mxu0 %vm1490_vm1, %v1345_v3  ;;  %1393 = vmatprep.subr.msk.bf16.mxu1 %vm1490_vm1, %v1345_v3  ;;  %v298_v11 = vld [vmem:[%s1689_s2] sm:$0xff] }
   0x5   :  { %1350 = vmatpush3.bf16.xpose.msk.msra.mxu0 %vm1490_vm1, %v1345_v3  ;;  %1401 = vmatpush3.bf16.xpose.msk.msra.mxu1 %vm1490_vm1, %v1345_v3 }
   0x6   :  { %1353 = vmatprep.subr.msk.bf16.mxu0 %vm1490_vm1, %v1351_v7  ;;  %1394 = vmatprep.subr.msk.bf16.mxu1 %vm1490_vm1, %v1351_v7 }
   0x7   :  { %317 = vperm.xlu0 %1414, %v298_v11  }
   0x8   :  { %11 = vsyncpa [#allocation4], 0  ;;  %v465_v12 = vld [vmem:[%s1691_s4] sm:$0xff]  ;;  %v1357_v13 = vpack.c.bf16 %v45_v10, %v44_v9  ;;  %v46_v14 = vld [vmem:[%s1688_s1 + $0x30] sm:$0xff]  ;;  %v550_v48 = vlaneseq  ;;  %vm1442_vm7 = vmmov 1  }
   0x9   :  { %v47_v15 = vld [vmem:[%s1688_s1 + $0x38] sm:$0xff]  ;;  %v48_v17 = vld [vmem:[%s1688_s1 + $0x40] sm:$0xff]  ;;  %v49_v18 = vld [vmem:[%s1688_s1 + $0x48] sm:$0xff] }
   0xa   :  { %v1363_v16 = vpack.c.bf16 %v47_v15, %v46_v14  ;;  %v1369_v19 = vpack.c.bf16 %v49_v18, %v48_v17  ;;  %v50_v20 = vld [vmem:[%s1688_s1 + $0x50] sm:$0xff]  ;;  %v51_v21 = vld [vmem:[%s1688_s1 + $0x58] sm:$0xff]  ;;  %v52_v23 = vld [vmem:[%s1688_s1 + $0x60] sm:$0xff]  ;;  %v551_v49 = vshrl.u32 %v550_v48, 7  ;;  %v568_v50 = vand.u32 127, %v550_v48 }
   0xb   :  { %483 = vperm.xlu0 %1414, %v465_v12   ;;  %v1375_v22 = vpack.c.bf16 %v51_v21, %v50_v20  ;;  %v53_v24 = vld [vmem:[%s1688_s1 + $0x68] sm:$0xff]  ;;  %v54_v26 = vld [vmem:[%s1688_s1 + $0x70] sm:$0xff]  ;;  %v55_v27 = vld [vmem:[%s1688_s1 + $0x78] sm:$0xff] }
   0xc   :  { %v1381_v25 = vpack.c.bf16 %v53_v24, %v52_v23  ;;  %v1387_v28 = vpack.c.bf16 %v55_v27, %v54_v26  ;;  %v25_v29 = vld [vmem:[%s1687_s0 + $0x8] sm:$0xff]  ;;  %v32_v30 = vld [vmem:[%s1687_s0 + $0x40] sm:$0xff]  ;;  %v26_v32 = vld [vmem:[%s1687_s0 + $0x10] sm:$0xff]  ;;  %vm589_vm2 = vcmp.ne.s32.totalorder %v551_v49, %v568_v50  ;;  %vm588_vm4 = vcmp.lt.s32.totalorder %v568_v50, 8 }
   0xd   :  { %1356 = vmatpush3.bf16.xpose.msk.msra.mxu0 %vm1490_vm1, %v1351_v7  ;;  %1402 = vmatpush3.bf16.xpose.msk.msra.mxu1 %vm1490_vm1, %v1351_v7  ;;  %v33_v31 = vld [vmem:[%s1687_s0 + $0x48] sm:$0xff]  ;;  %v34_v33 = vld [vmem:[%s1687_s0 + $0x50] sm:$0xff]  ;;  %v27_v34 = vld [vmem:[%s1687_s0 + $0x18] sm:$0xff]  ;;  %v768_v57 = vsub.s32 0, %v551_v49  ;;  %v820_v58 = vsub.s32 1, %v551_v49  ;;  %v872_v59 = vsub.s32 2, %v551_v49 }
   0xe   :  { %1359 = vmatprep.subr.msk.bf16.mxu0 %vm1490_vm1, %v1357_v13  ;;  %1395 = vmatprep.subr.msk.bf16.mxu1 %vm1490_vm1, %v1357_v13  ;;  %v28_v35 = vld [vmem:[%s1687_s0 + $0x20] sm:$0xff]  ;;  %v35_v36 = vld [vmem:[%s1687_s0 + $0x58] sm:$0xff]  ;;  %v29_v37 = vld [vmem:[%s1687_s0 + $0x28] sm:$0xff]  ;;  %v924_v60 = vsub.s32 3, %v551_v49  ;;  %v976_v62 = vsub.s32 4, %v551_v49  ;;  %v1028_v63 = vsub.s32 5, %v551_v49 }
   0xf   :  { %1333 = vmatprep.mubr.msk.f32.mxu1 %vm56_vm0, %v32_v30  ;;  %v36_v38 = vld [vmem:[%s1687_s0 + $0x60] sm:$0xff]  ;;  %v30_v39 = vld [vmem:[%s1687_s0 + $0x30] sm:$0xff]  ;;  %v37_v40 = vld [vmem:[%s1687_s0 + $0x68] sm:$0xff]  ;;  %v1080_v1 = vsub.s32 6, %v551_v49  ;;  %v1132_v9 = vsub.s32 7, %v551_v49 }
  0x10   :  { %v31_v41 = vld [vmem:[%s1687_s0 + $0x38] sm:$0xff]  ;;  %v38_v42 = vld [vmem:[%s1687_s0 + $0x70] sm:$0xff]  ;;  %v1254_v44 = vld [vmem:[%s1690_s3] ss:$0 sm:$0xff] }
  0x11   :  { %v39_v43 = vld [vmem:[%s1687_s0 + $0x78] sm:$0xff]  ;;  %v1255_v51 = vld [vmem:[%s1692_s5] ss:$0 sm:$0xff]  ;;  %s1443_s0 = smov [#allocation3]  }
  0x12   :  { %s1214_s3 = sshll.u32 %s1443_s0, 4  ;;  %s1215_s3 = int_to_ptr.vmem [resolvable:$true] %s1214_s3 }
  0x13   :  { %s1417_s2 = scalar_lea.vmem %s1215_s3, 128  ;;  %p1422_p1 = scmp.lt.s32.totalorder %s1215_s3, %s1215_s3 }
  0x14   :  { %p1418_p0 = scmp.ne.s32.totalorder %s1215_s3, %s1417_s2  ;;  %p1423_p2 = scmp.lt.s32.totalorder %s1417_s2, %s1417_s2 }
  0x15   :  { %1362 = vmatpush3.bf16.xpose.msk.msra.mxu0 %vm1490_vm1, %v1357_v13  ;;  %1403 = vmatpush3.bf16.xpose.msk.msra.mxu1 %vm1490_vm1, %v1357_v13 }
  0x16   :  { %1365 = vmatprep.subr.msk.bf16.mxu0 %vm1490_vm1, %v1363_v16  ;;  %1396 = vmatprep.subr.msk.bf16.mxu1 %vm1490_vm1, %v1363_v16  ;;  %p1424_p3 = por %p1423_p2, %p1422_p1 }
  0x18   :  { %p1425_p4 = pnand %p1424_p3, %p1418_p0 }
  0x1d   :  { %1368 = vmatpush3.bf16.xpose.msk.msra.mxu0 %vm1490_vm1, %v1363_v16  ;;  %1404 = vmatpush3.bf16.xpose.msk.msra.mxu1 %vm1490_vm1, %v1363_v16 }
  0x1e   :  { %1371 = vmatprep.subr.msk.bf16.mxu0 %vm1490_vm1, %v1369_v19  ;;  %1397 = vmatprep.subr.msk.bf16.mxu1 %vm1490_vm1, %v1369_v19 }
  0x25   :  { %1374 = vmatpush3.bf16.xpose.msk.msra.mxu0 %vm1490_vm1, %v1369_v19  ;;  %1405 = vmatpush3.bf16.xpose.msk.msra.mxu1 %vm1490_vm1, %v1369_v19 }
  0x26   :  { %1377 = vmatprep.subr.msk.bf16.mxu0 %vm1490_vm1, %v1375_v22  ;;  %1398 = vmatprep.subr.msk.bf16.mxu1 %vm1490_vm1, %v1375_v22 }
  0x2d   :  { %1380 = vmatpush3.bf16.xpose.msk.msra.mxu0 %vm1490_vm1, %v1375_v22  ;;  %1406 = vmatpush3.bf16.xpose.msk.msra.mxu1 %vm1490_vm1, %v1375_v22 }
  0x2e   :  { %1383 = vmatprep.subr.msk.bf16.mxu0 %vm1490_vm1, %v1381_v25  ;;  %1399 = vmatprep.subr.msk.bf16.mxu1 %vm1490_vm1, %v1381_v25 }
  0x35   :  { %1386 = vmatpush3.bf16.xpose.msk.msra.mxu0 %vm1490_vm1, %v1381_v25  ;;  %1407 = vmatpush3.bf16.xpose.msk.msra.mxu1 %vm1490_vm1, %v1381_v25 }
  0x36   :  { %1389 = vmatprep.subr.msk.bf16.mxu0 %vm1490_vm1, %v1387_v28  ;;  %1400 = vmatprep.subr.msk.bf16.mxu1 %vm1490_vm1, %v1387_v28 }
  0x3d   :  { %1392 = vmatpush3.bf16.xpose.msk.msra.mxu0 %vm1490_vm1, %v1387_v28  ;;  %1408 = vmatpush3.bf16.xpose.msk.msra.mxu1 %vm1490_vm1, %v1387_v28 }
  0x44   :  { %1322 = vmatmul.mubr.msk.f32.vlgmr.msra.gmra.mrb[0].mxu0 %vm56_vm0, %v25_v29  ;;  %1334 = vmatmul.mubr.msk.f32.vlgmr.msra.gmra.mrb[0].mxu1 %vm56_vm0, %v33_v31 }
  0x45   :  { %1324 = vmatprep.mubr.msk.f32.mxu0 %vm56_vm0, %v26_v32  ;;  %1336 = vmatprep.mubr.msk.f32.mxu1 %vm56_vm0, %v34_v33 }
  0x48   :  { %1325 = vmatmul.mubr.msk.f32.gmra.mrb[2].mxu0 %vm56_vm0, %v27_v34  ;;  %1337 = vmatmul.mubr.msk.f32.gmra.mrb[2].mxu1 %vm56_vm0, %v35_v36 }
  0x49   :  { %1327 = vmatprep.mubr.msk.f32.mxu0 %vm56_vm0, %v28_v35  ;;  %1339 = vmatprep.mubr.msk.f32.mxu1 %vm56_vm0, %v36_v38 }
  0x4c   :  { %1328 = vmatmul.mubr.msk.f32.gmra.mrb[4].mxu0 %vm56_vm0, %v29_v37  ;;  %1340 = vmatmul.mubr.msk.f32.gmra.mrb[4].mxu1 %vm56_vm0, %v37_v40 }
  0x4d   :  { %1330 = vmatprep.mubr.msk.f32.mxu0 %vm56_vm0, %v30_v39  ;;  %1342 = vmatprep.mubr.msk.f32.mxu1 %vm56_vm0, %v38_v42 }
  0x50   :  { %1331 = vmatmul.mubr.msk.f32.gmra.mrb[6].mxu0 %vm56_vm0, %v31_v41  ;;  %1343 = vmatmul.mubr.msk.f32.gmra.mrb[6].mxu1 %vm56_vm0, %v39_v43 }
  0x86   :  { %v318_v45 = vpop.permute.xlu0 %317 }
  0x87   :  { %v401_v46 = vmul.f32 %v1254_v44, %v318_v45 }
  0x89   :  { %v417_v47 = vmax.f32 %v401_v46, 1e-16 }
  0x8a   :  { %v484_v52 = vpop.permute.xlu0 %483 }
  0x8b   :  { %1415 = vrsqrt.f32 %v417_v47  ;;  %vm534_vm3 = vcmp.eq.s32.totalorder %v484_v52, %v1255_v51 }
  0x8c   :  { %vm605_vm5 = vmand %vm534_vm3, %vm589_vm2 }
  0x8d   :  { %vm637_vm6 = vmand %vm605_vm5, %vm588_vm4 }
  0x8e   :  { %vm653_vm8 = vmxor %vm534_vm3, %vm1442_vm7 }
  0x8f   :  { %vm685_vm9 = vmand %vm653_vm8, %vm588_vm4 }
  0x95   :  { %v1416_v53 = vpop.eup %1415 }
 0x117   :  { %v1323_v54 = vpop.f32.mrb[0].mxu0 }
 0x118   :  { %v219_v55 = vpop.f32.mrb[1].mxu0 }
 0x119   :  { %v449_v56 = vmul.f32 %v1416_v53, %v219_v55 }
 0x11b   :  { %v701_v61 = vsel %vm637_vm6, %v449_v56, 1e+30  ;;  %v749_v6 = vsel %vm685_vm9, %v449_v56, -1e+30 }
 0x11c   :  { %v1256_v0 = vadd.f32 -0.5, %v701_v61 }
 0x11e   :  { %v769_v2 = vrot.slane %v1256_v0, %v768_v57  ;;  %v821_v3 = vrot.slane %v1256_v0, %v820_v58  ;;  %v873_v4 = vrot.slane %v1256_v0, %v872_v59  ;;  %v925_v5 = vrot.slane %v1256_v0, %v924_v60 }
 0x11f   :  { %v977_v7 = vrot.slane %v1256_v0, %v976_v62  ;;  %v1029_v8 = vrot.slane %v1256_v0, %v1028_v63  ;;  %v1081_v24 = vrot.slane %v1256_v0, %v1080_v1  ;;  %v1133_v31 = vrot.slane %v1256_v0, %v1132_v9  ;;  %v1335_v9 = vpop.f32.mrb[0].mxu1 }
 0x120   :  { %v770_v10 = vsub.f32 %v749_v6, %v769_v2  ;;  %v771_v11 = vsub.f32 -1e+30, %v769_v2  ;;  %v822_v12 = vsub.f32 %v749_v6, %v821_v3  ;;  %v823_v13 = vsub.f32 -1e+30, %v821_v3 }
 0x121   :  { %v874_v14 = vsub.f32 %v749_v6, %v873_v4  ;;  %v875_v15 = vsub.f32 -1e+30, %v873_v4  ;;  %v926_v16 = vsub.f32 %v749_v6, %v925_v5  ;;  %v927_v17 = vsub.f32 -1e+30, %v925_v5 }
 0x122   :  { %v786_v18 = vmax.f32 %v770_v10, 0.0  ;;  %v787_v19 = vmax.f32 %v771_v11, 0.0  ;;  %v838_v20 = vmax.f32 %v822_v12, 0.0  ;;  %v839_v21 = vmax.f32 %v823_v13, 0.0  ;;  %v1326_v10 = vpop.f32.mrb[2].mxu0  ;;  %v259_v11 = vpop.f32.mrb[1].mxu1 }
 0x123   :  { %v890_v22 = vmax.f32 %v874_v14, 0.0  ;;  %v891_v23 = vmax.f32 %v875_v15, 0.0  ;;  %v978_v27 = vsub.f32 %v749_v6, %v977_v7  ;;  %v979_v28 = vsub.f32 -1e+30, %v977_v7  ;;  %v229_v12 = vpop.f32.mrb[3].mxu0  ;;  %v1338_v13 = vpop.f32.mrb[2].mxu1 }
 0x124   :  { %v854_v25 = vadd.f32 %v838_v20, %v786_v18  ;;  %v855_v26 = vadd.f32 %v839_v21, %v787_v19  ;;  %v1030_v29 = vsub.f32 %v749_v6, %v1029_v8  ;;  %v1031_v30 = vsub.f32 -1e+30, %v1029_v8  ;;  %v1329_v14 = vpop.f32.mrb[4].mxu0  ;;  %v269_v15 = vpop.f32.mrb[3].mxu1 }
 0x125   :  { %v942_v34 = vmax.f32 %v926_v16, 0.0  ;;  %v943_v35 = vmax.f32 %v927_v17, 0.0  ;;  %v1082_v36 = vsub.f32 %v749_v6, %v1081_v24  ;;  %v1083_v37 = vsub.f32 -1e+30, %v1081_v24  ;;  %v239_v16 = vpop.f32.mrb[5].mxu0  ;;  %v1341_v17 = vpop.f32.mrb[4].mxu1 }
 0x126   :  { %v906_v32 = vadd.f32 %v890_v22, %v854_v25  ;;  %v907_v33 = vadd.f32 %v891_v23, %v855_v26  ;;  %v994_v40 = vmax.f32 %v978_v27, 0.0  ;;  %v995_v41 = vmax.f32 %v979_v28, 0.0  ;;  %v1332_v18 = vpop.f32.mrb[6].mxu0  ;;  %v279_v19 = vpop.f32.mrb[5].mxu1 }
 0x127   :  { %v1046_v42 = vmax.f32 %v1030_v29, 0.0  ;;  %v1047_v43 = vmax.f32 %v1031_v30, 0.0  ;;  %v1134_v46 = vsub.f32 %v749_v6, %v1133_v31  ;;  %v1135_v47 = vsub.f32 -1e+30, %v1133_v31  ;;  %v249_v20 = vpop.f32.mrb[7].mxu0  ;;  %v1344_v21 = vpop.f32.mrb[6].mxu1 }
 0x128   :  { %v958_v38 = vadd.f32 %v942_v34, %v906_v32  ;;  %v959_v39 = vadd.f32 %v943_v35, %v907_v33  ;;  %v1098_v50 = vmax.f32 %v1082_v36, 0.0  ;;  %v1099_v51 = vmax.f32 %v1083_v37, 0.0  ;;  %v289_v22 = vpop.f32.mrb[7].mxu1 }
 0x129   :  { %v1150_v54 = vmax.f32 %v1134_v46, 0.0  ;;  %v1151_v55 = vmax.f32 %v1135_v47, 0.0 }
 0x12a   :  { %v1010_v44 = vadd.f32 %v994_v40, %v958_v38  ;;  %v1011_v45 = vadd.f32 %v995_v41, %v959_v39 }
 0x12c   :  { %v1062_v48 = vadd.f32 %v1046_v42, %v1010_v44  ;;  %v1063_v49 = vadd.f32 %v1047_v43, %v1011_v45 }
 0x12e   :  { %v1114_v52 = vadd.f32 %v1098_v50, %v1062_v48  ;;  %v1115_v53 = vadd.f32 %v1099_v51, %v1063_v49 }
 0x130   :  { %v1166_v56 = vadd.f32 %v1150_v54, %v1114_v52  ;;  %v1167_v57 = vadd.f32 %v1151_v55, %v1115_v53 }
 0x132   :  { %v1182_v58 = vadd.f32 %v1167_v57, %v1166_v56 }
 0x134   :  { %v1183_v59 = vadd.f32 %v1182_v58, %v1167_v57 }
 0x136   :  { %v1184_v60 = vadd.f32 %v1183_v59, %v1167_v57 }
 0x138   :  { %v1185_v61 = vadd.f32 %v1184_v60, %v1167_v57 }
 0x13a   :  { %v1186_v62 = vadd.f32 %v1185_v61, %v1167_v57 }
 0x13c   :  { %v1187_v63 = vadd.f32 %v1186_v62, %v1167_v57 }
 0x13e   :  { %v1188_v0 = vadd.f32 %v1187_v63, %v1167_v57 }
 0x140   :  { %v1189_v1 = vadd.f32 %v1188_v0, %v1167_v57 }
 0x142   :  { %v1190_v2 = vadd.f32 %v1189_v1, %v1167_v57 }
 0x144   :  { %v1191_v3 = vadd.f32 %v1190_v2, %v1167_v57 }
 0x146   :  { %v1192_v4 = vadd.f32 %v1191_v3, %v1167_v57 }
 0x148   :  { %v1193_v5 = vadd.f32 %v1192_v4, %v1167_v57 }
 0x14a   :  { %v1194_v6 = vadd.f32 %v1193_v5, %v1167_v57 }
 0x14c   :  { %v1195_v7 = vadd.f32 %v1194_v6, %v1167_v57 }
 0x14e   :  { %v1196_v8 = vadd.f32 %v1195_v7, %v1167_v57 }
 0x150   :  { %1197 = vadd.xlane.f32.xlu1 %v1196_v8 }
 0x1dd   :  { %v1198_v23 = vpop.xlane.xlu1 %1197 }
 0x1de   :  { %v1199_v24 = vrot.slane %v1198_v23, 4 }
 0x1e0   :  { %v1200_v25 = vadd.f32 %v1199_v24, %v1198_v23 }
 0x1e2   :  { %v1201_v26 = vrot.slane %v1200_v25, 2 }
 0x1e4   :  { %v1202_v27 = vadd.f32 %v1201_v26, %v1200_v25 }
 0x1e6   :  { %v1203_v28 = vrot.slane %v1202_v27, 1 }
 0x1e8   :  { %v1204_v29 = vadd.f32 %v1203_v28, %v1202_v27 }
 0x1ea   :  { %1409 = vpush %v1204_v29 }
 0x21b   :  { %s1410_s5 = spop %1409 }
 0x21c   :  { %v1206_v30 = vstv %s1410_s5 }
 0x21d   :  { %1207 = vst [vmem:[#allocation3] sm:$0xff] %v1206_v30 }
 0x21e   :  { %1428 = shalt.err (!%p1425_p4)
}
 0x21f   :  { %s1429_s4 = scalar_lea.hbm %s1693_s6, 128 }
 0x220   :  { %p1430_p5 = scmp.ne.s32.totalorder %s1693_s6, %s1429_s4  ;;  %p1433_p6 = scmp.lt.u32.totalorder %s1429_s4, %s1693_s6 }
 0x222   :  { %p1435_p7 = pnand %p1433_p6, %p1430_p5 }
 0x224   :  { %1438 = shalt.err (!%p1435_p7)
}
 0x225   :  { %1217 = dma.vmem_to_hbm [thread:$0]  %s1215_s3, 128, %s1693_s6, [#allocation4]  }
 0x226   :  { %1439 = dma.done.wait [#allocation4], 128  }
 0x227   :  { %1440 = vsyncadd [#allocation4], 4294967168 }
 0x228   :  { %1221 = vsyncpa [#allocation4], 1 }

</bundles_post_ra>
